<compile_context>
chip_gen: v5e
topology: v5e:2x2
jax: 0.10.0
libtpu: 0.0.40
codegen_flags: <defaults>
</compile_context>

<pallas_src>
import jax
import jax.numpy as jnp
from jax.experimental import pallas as pl
from jax.experimental.pallas import tpu as pltpu


def proposal_kernel(x_ref, w1_ref, b1_ref, w2_ref, b2_ref, out_ref):
    # x_ref : (Bblk, 9*Cin, HW)   im2col patches, lane-dense (HW last)
    # w1_ref: (Cmid, 9*Cin)       folded 3x3 conv weight
    # b1_ref: (Cmid, 1)
    # w2_ref: (6, Cmid)           1x1 conv weight
    # b2_ref: (6, 1)
    # out_ref: (Bblk, 6, HW)      channel-major, lane-dense output
    bblk = x_ref.shape[0]
    w1 = w1_ref[...].astype(jnp.float32)
    b1 = b1_ref[...].astype(jnp.float32)
    w2 = w2_ref[...].astype(jnp.float32)
    b2 = b2_ref[...].astype(jnp.float32)

    for b in range(bblk):  # static unroll; Bblk is small
        patches = x_ref[b].astype(jnp.float32)                            # (9*Cin, HW)
        acc = jnp.dot(w1, patches, preferred_element_type=jnp.float32)    # (Cmid, HW)
        d = jnp.maximum(acc + b1, 0.0)                                    # ReLU
        t = jnp.dot(w2, d, preferred_element_type=jnp.float32) + b2       # (6, HW)
        out_ref[b] = t.astype(out_ref.dtype)


def proposal_net(x_nchw, w1, b1, w2, b2, *, bblk=None):
    """Forward pass of ProposalNet.

    x_nchw: (B, Cin, H, W)                     -- PyTorch layout
    w1:     (Cmid, Cin, 3, 3), b1: (Cmid,)     -- nn.Conv2d(inp, inp//2, 3, 1, 1)
    w2:     (6, Cmid, 1, 1),   b2: (6,)        -- nn.Conv2d(inp//2, 6, 1, 1, 0)
    returns (B, 6*H*W)   (== self.tidy(d).view(batch_size, -1))
    """
    B, Cin, H, W = x_nchw.shape
    Cmid = w1.shape[0]
    HW = H * W

    # --- batch blocking: amortize grid overhead, keep >=2 grid steps (v7x) ---
    if bblk is None:
        bblk = max(1, B // 2)
    bblk = max(1, min(bblk, B))
    Bp = ((B + bblk - 1) // bblk) * bblk      # pad batch to a multiple of bblk

    # --- wrapper-side im2col (pure XLA, outside the hot path) ---------------
    x_pad = jnp.pad(x_nchw, ((0, Bp - B), (0, 0), (1, 1), (1, 1)))
    taps = [x_pad[:, :, dy:dy + H, dx:dx + W]
            for dy in range(3) for dx in range(3)]
    patches = jnp.stack(taps, axis=1).reshape(Bp, 9 * Cin, HW)   # (Bp, 9*Cin, HW)

    # fold conv weights to matmul operands (tap-major, matching patch order)
    w1f = jnp.transpose(w1, (0, 2, 3, 1)).reshape(Cmid, 9 * Cin)  # (Cmid, 9*Cin)
    w2f = w2[:, :, 0, 0]                                          # (6, Cmid)
    b1c = b1.reshape(Cmid, 1)
    b2c = b2.reshape(6, 1)

    out = pl.pallas_call(
        proposal_kernel,
        out_shape=jax.ShapeDtypeStruct((Bp, 6, HW), x_nchw.dtype),
        grid=(Bp // bblk,),
        in_specs=[
            pl.BlockSpec((bblk, 9 * Cin, HW), lambda i: (i, 0, 0)),
            pl.BlockSpec((Cmid, 9 * Cin), lambda i: (0, 0)),
            pl.BlockSpec((Cmid, 1), lambda i: (0, 0)),
            pl.BlockSpec((6, Cmid), lambda i: (0, 0)),
            pl.BlockSpec((6, 1), lambda i: (0, 0)),
        ],
        out_specs=pl.BlockSpec((bblk, 6, HW), lambda i: (i, 0, 0)),
        compiler_params=pltpu.CompilerParams(
            dimension_semantics=("parallel",)),
    )(patches, w1f, b1c, w2f, b2c)

    # Channel-major (B, 6, H*W) already matches PyTorch's NCHW flatten order:
    # the final reshape is free (no transpose needed).
    return out[:B].reshape(B, 6 * HW)


def _reference(x_nchw, w1, b1, w2, b2):
    """Pure-JAX reference (lax conv) for correctness checking."""
    dn = jax.lax.conv_dimension_numbers(x_nchw.shape, w1.shape,
                                        ("NCHW", "OIHW", "NCHW"))
    d = jax.lax.conv_general_dilated(x_nchw, w1, (1, 1), ((1, 1), (1, 1)),
                                     dimension_numbers=dn)
    d = jax.nn.relu(d + b1.reshape(1, -1, 1, 1))
    dn2 = jax.lax.conv_dimension_numbers(d.shape, w2.shape,
                                         ("NCHW", "OIHW", "NCHW"))
    t = jax.lax.conv_general_dilated(d, w2, (1, 1), ((0, 0), (0, 0)),
                                     dimension_numbers=dn2)
    t = t + b2.reshape(1, -1, 1, 1)
    return t.reshape(x_nchw.shape[0], -1)


if __name__ == "__main__":
    # Small shapes consistent with the module: inp=8 channels, 16x16 spatial.
    B, INP, H, W = 2, 8, 16, 16
    CMID = INP // 2

    key = jax.random.PRNGKey(0)
    kx, k1, k2, k3, k4 = jax.random.split(key, 5)

    x = jax.random.normal(kx, (B, INP, H, W), dtype=jnp.float32)
    # deterministic synthetic parameters (kaiming-ish scaling)
    w1 = jax.random.normal(k1, (CMID, INP, 3, 3), jnp.float32) * (1.0 / (INP * 9) ** 0.5)
    b1 = jax.random.normal(k2, (CMID,), jnp.float32) * 0.01
    w2 = jax.random.normal(k3, (6, CMID, 1, 1), jnp.float32) * (1.0 / CMID ** 0.5)
    b2 = jax.random.normal(k4, (6,), jnp.float32) * 0.01

    out = jax.jit(proposal_net)(x, w1, b1, w2, b2)
    out = jax.block_until_ready(out)

    assert out.shape == (B, 6 * H * W), out.shape

    ref = jax.block_until_ready(_reference(x, w1, b1, w2, b2))
    assert jnp.allclose(out, ref, rtol=2e-2, atol=1e-2), \
        float(jnp.max(jnp.abs(out - ref)))

    print("KERNEL_OK")
</pallas_src>

<mosaic_0001>
module attributes {stable_mosaic.version = 11 : i64} {
  func.func @proposal_kernel(%arg0: i32, %arg1: memref<1x72x256xf32, #tpu.memory_space<vmem>>, %arg2: memref<4x72xf32, #tpu.memory_space<vmem>>, %arg3: memref<4x1xf32, #tpu.memory_space<vmem>>, %arg4: memref<6x4xf32, #tpu.memory_space<vmem>>, %arg5: memref<6x1xf32, #tpu.memory_space<vmem>>, %arg6: memref<1x6x256xf32, #tpu.memory_space<vmem>>) attributes {dimension_semantics = [#tpu.dimension_semantics<parallel>], iteration_bounds = array<i64: 2>, scalar_prefetch = 0 : i64, scratch_operands = 0 : i64, tpu.core_type = #tpu.core_type<tc>, window_params = [{transform_indices = @transform_0, window_bounds = array<i64: 1, 72, 256>}, {pipeline_mode = #tpu.pipeline_mode<synchronous>, transform_indices = @transform_1, window_bounds = array<i64: 4, 72>}, {pipeline_mode = #tpu.pipeline_mode<synchronous>, transform_indices = @transform_2, window_bounds = array<i64: 4, 1>}, {pipeline_mode = #tpu.pipeline_mode<synchronous>, transform_indices = @transform_3, window_bounds = array<i64: 6, 4>}, {pipeline_mode = #tpu.pipeline_mode<synchronous>, transform_indices = @transform_4, window_bounds = array<i64: 6, 1>}, {transform_indices = @transform_5, window_bounds = array<i64: 1, 6, 256>}]} {
    %c0 = arith.constant 0 : index
    %c0_0 = arith.constant 0 : index
    %0 = vector.load %arg2[%c0, %c0_0] : memref<4x72xf32, #tpu.memory_space<vmem>>, vector<4x72xf32>
    %c0_1 = arith.constant 0 : index
    %c0_2 = arith.constant 0 : index
    %1 = vector.load %arg3[%c0_1, %c0_2] : memref<4x1xf32, #tpu.memory_space<vmem>>, vector<4x1xf32>
    %c0_3 = arith.constant 0 : index
    %c0_4 = arith.constant 0 : index
    %2 = vector.load %arg4[%c0_3, %c0_4] : memref<6x4xf32, #tpu.memory_space<vmem>>, vector<6x4xf32>
    %c0_5 = arith.constant 0 : index
    %c0_6 = arith.constant 0 : index
    %3 = vector.load %arg5[%c0_5, %c0_6] : memref<6x1xf32, #tpu.memory_space<vmem>>, vector<6x1xf32>
    %c0_7 = arith.constant 0 : index
    %c0_8 = arith.constant 0 : index
    %c0_9 = arith.constant 0 : index
    %4 = vector.load %arg1[%c0_7, %c0_8, %c0_9] : memref<1x72x256xf32, #tpu.memory_space<vmem>>, vector<1x72x256xf32>
    %5 = vector.shape_cast %4 : vector<1x72x256xf32> to vector<72x256xf32>
    %cst = arith.constant dense<0.000000e+00> : vector<4x256xf32>
    %6 = tpu.matmul %0, %5, %cst {dimension_numbers = #tpu.dot_dimension_numbers<[1], [0], [0], [1], [0, 0, 1, 1], [], []>} : vector<4x72xf32>, vector<72x256xf32>, vector<4x256xf32> -> vector<4x256xf32>
    %7 = vector.broadcast %1 : vector<4x1xf32> to vector<4x256xf32>
    %8 = arith.addf %6, %7 : vector<4x256xf32>
    %cst_10 = arith.constant 0.000000e+00 : f32
    %9 = vector.broadcast %cst_10 : f32 to vector<4x256xf32>
    %10 = arith.maximumf %8, %9 : vector<4x256xf32>
    %cst_11 = arith.constant dense<0.000000e+00> : vector<6x256xf32>
    %11 = tpu.matmul %2, %10, %cst_11 {dimension_numbers = #tpu.dot_dimension_numbers<[1], [0], [0], [1], [0, 0, 1, 1], [], []>} : vector<6x4xf32>, vector<4x256xf32>, vector<6x256xf32> -> vector<6x256xf32>
    %12 = vector.broadcast %3 : vector<6x1xf32> to vector<6x256xf32>
    %13 = arith.addf %11, %12 : vector<6x256xf32>
    %c0_12 = arith.constant 0 : index
    %c0_13 = arith.constant 0 : index
    %c0_14 = arith.constant 0 : index
    %14 = vector.load %arg6[%c0_12, %c0_13, %c0_14] : memref<1x6x256xf32, #tpu.memory_space<vmem>>, vector<1x6x256xf32>
    %15 = vector.shape_cast %14 : vector<1x6x256xf32> to vector<6x256xf32>
    %16 = vector.shape_cast %13 : vector<6x256xf32> to vector<1x6x256xf32>
    tpu.vector_store %arg6[%c0_12, %c0_13, %c0_14], %16 {strides = array<i32>} : memref<1x6x256xf32, #tpu.memory_space<vmem>>, vector<1x6x256xf32>,
    return
  }
  func.func @transform_0(%arg0: i32) -> (i32, i32, i32) {
    %c0_i32 = arith.constant 0 : i32
    %c0_i32_0 = arith.constant 0 : i32
    %c0_i32_1 = arith.constant 0 : i32
    return %arg0, %c0_i32, %c0_i32_0 : i32, i32, i32
  }
  func.func @transform_1(%arg0: i32) -> (i32, i32) {
    %c0_i32 = arith.constant 0 : i32
    %c0_i32_0 = arith.constant 0 : i32
    %c0_i32_1 = arith.constant 0 : i32
    return %c0_i32, %c0_i32_0 : i32, i32
  }
  func.func @transform_2(%arg0: i32) -> (i32, i32) {
    %c0_i32 = arith.constant 0 : i32
    %c0_i32_0 = arith.constant 0 : i32
    %c0_i32_1 = arith.constant 0 : i32
    return %c0_i32, %c0_i32_0 : i32, i32
  }
  func.func @transform_3(%arg0: i32) -> (i32, i32) {
    %c0_i32 = arith.constant 0 : i32
    %c0_i32_0 = arith.constant 0 : i32
    %c0_i32_1 = arith.constant 0 : i32
    return %c0_i32, %c0_i32_0 : i32, i32
  }
  func.func @transform_4(%arg0: i32) -> (i32, i32) {
    %c0_i32 = arith.constant 0 : i32
    %c0_i32_0 = arith.constant 0 : i32
    %c0_i32_1 = arith.constant 0 : i32
    return %c0_i32, %c0_i32_0 : i32, i32
  }
  func.func @transform_5(%arg0: i32) -> (i32, i32, i32) {
    %c0_i32 = arith.constant 0 : i32
    %c0_i32_0 = arith.constant 0 : i32
    %c0_i32_1 = arith.constant 0 : i32
    return %arg0, %c0_i32, %c0_i32_0 : i32, i32, i32
  }
}

</mosaic_0001>

<bundles_post_ra>
// kernel: proposal_net.1
= control target key start
LH: loop header
LB: loop body
LE: loop exit
PB: predicated region body
PF: predicated region fallthrough
CT: control target
= control target key end

     0   :  { %s478_s18 = smov 0   ;;  %s531_s0 = inlined_call_operand.vmem [shape: f32[2,72,256], index: 0, kind: input, shape index: {}]   ;;  %s532_s1 = inlined_call_operand.vmem [shape: f32[4,72], index: 1, kind: input, shape index: {}]   ;;  %s533_s2 = inlined_call_operand.vmem [shape: f32[4,1], index: 2, kind: input, shape index: {}]   ;;  %s534_s3 = inlined_call_operand.vmem [shape: f32[6,4], index: 3, kind: input, shape index: {}]   ;;  %s535_s4 = inlined_call_operand.vmem [shape: f32[6,1], index: 4, kind: input, shape index: {}]   ;;  %s536_s5 = inlined_call_operand.vmem [shape: f32[2,6,256], index: 5, kind: output, shape index: {}]  }
   0x1 LB: > { %s411_s19 = sadd.s32 4294967295, %s445_s18   ;;  %p415_p0 = scmp.ge.s32.totalorder %s445_s18, 1  ;;  %s445_s18 = sphi %s478_s18, %s15_s18  }
   0x2   : > { %p187_p1 = scmp.lt.s32.totalorder %s445_s18, 3 }
   0x4   : > { %p188_p2 = pnand %p415_p0, %p187_p1 }
   0x5   : > { %p215_p3 = scmp.lt.s32.totalorder (!%p188_p2), %s411_s19, 1 }
   0x6   : > { %191 = sbr.rel (%p188_p2) target bundleno = 300 (0x12c), region = 40 }
   0xb   : > { %v447_v0 = vmov 0   ;;  %v226_v1 = vld [vmem:[%s533_s2] sm:$0xf]  ;;  %s538_s19 = smov (!%p215_p3, %s411_s19), 1  ;;  %vm252_vm0 = vcmask 588800   ;;  %vm307_vm1 = vcmask 1043456  }
   0xc   : > { %438 = vset.pattern.permute.xlu0 %v447_v0  ;;  %s428_s22 = smul.u32 144, %s538_s19  ;;  %v228_v6 = vld [vmem:[%s535_s4] sm:$0x3f]  ;;  %vm303_vm2 = vcmask 31744   ;;  %s427_s7 = sshll.u32 %s538_s19, 4 }
   0xd   : > { %249 = vperm.xlu0 %438, %v226_v1   ;;  %v225_v21 = vld [vmem:[%s532_s1] sm:$0xf]  ;;  %s224_s10 = scalar_lea.vmem %s536_s5, %s427_s7 }
   0xe   : > { %s495_s25 = scalar_lea.vmem %s531_s0, %s428_s22  ;;  %v227_v29 = vld [vmem:[%s534_s3] sm:$0x3f] }
   0xf   : > { %v245_v2 = vld [vmem:[%s495_s25 + $0x80] sm:$0xff]  ;;  %v246_v3 = vld [vmem:[%s495_s25 + $0x88] sm:$0xff]  ;;  %v243_v4 = vld [vmem:[%s495_s25 + $0x70] sm:$0xff] }
  0x10   : > { %263 = vmatpush.msra.mxu0 %v245_v2  ;;  %283 = vmatpush.msra.mxu1 %v246_v3  ;;  %v244_v5 = vld [vmem:[%s495_s25 + $0x78] sm:$0xff]  ;;  %v241_v7 = vld [vmem:[%s495_s25 + $0x60] sm:$0xff]  ;;  %v242_v8 = vld [vmem:[%s495_s25 + $0x68] sm:$0xff] }
  0x11   : > { %v239_v9 = vld [vmem:[%s495_s25 + $0x50] sm:$0xff]  ;;  %v240_v10 = vld [vmem:[%s495_s25 + $0x58] sm:$0xff]  ;;  %v237_v11 = vld [vmem:[%s495_s25 + $0x40] sm:$0xff] }
  0x12   : > { %264 = vmatpush.msra.mxu0 %v243_v4  ;;  %284 = vmatpush.msra.mxu1 %v244_v5  ;;  %v238_v12 = vld [vmem:[%s495_s25 + $0x48] sm:$0xff]  ;;  %v235_v13 = vld [vmem:[%s495_s25 + $0x30] sm:$0xff]  ;;  %v236_v14 = vld [vmem:[%s495_s25 + $0x38] sm:$0xff] }
  0x13   : > { %v233_v15 = vld [vmem:[%s495_s25 + $0x20] sm:$0xff]  ;;  %v234_v16 = vld [vmem:[%s495_s25 + $0x28] sm:$0xff]  ;;  %v231_v17 = vld [vmem:[%s495_s25 + $0x10] sm:$0xff] }
  0x14   : > { %265 = vmatpush.msra.mxu0 %v241_v7  ;;  %285 = vmatpush.msra.mxu1 %v242_v8  ;;  %v232_v18 = vld [vmem:[%s495_s25 + $0x18] sm:$0xff]  ;;  %v229_v19 = vld [vmem:[%s495_s25] sm:$0xff]  ;;  %v230_v20 = vld [vmem:[%s495_s25 + $0x8] sm:$0xff] }
  0x15   : > { %300 = vperm.xlu0 %438, %v228_v6  }
  0x16   : > { %266 = vmatpush.msra.mxu0 %v239_v9  ;;  %286 = vmatpush.msra.mxu1 %v240_v10 }
  0x18   : > { %267 = vmatpush.msra.mxu0 %v237_v11  ;;  %287 = vmatpush.msra.mxu1 %v238_v12 }
  0x1a   : > { %268 = vmatpush.msra.mxu0 %v235_v13  ;;  %288 = vmatpush.msra.mxu1 %v236_v14 }
  0x1c   : > { %269 = vmatpush.msra.mxu0 %v233_v15  ;;  %289 = vmatpush.msra.mxu1 %v234_v16 }
  0x1e   : > { %270 = vmatpush.msra.mxu0 %v231_v17  ;;  %290 = vmatpush.msra.mxu1 %v232_v18 }
  0x20   : > { %271 = vmatpush.msra.mxu0 %v229_v19  ;;  %291 = vmatpush.msra.mxu1 %v230_v20 }
  0x21   : > { %419 = vmatmul.msk.f32.vlgmr.msra.gmra.mxu0 %vm252_vm0, %v225_v21  ;;  %420 = vmatmul.msk.f32.vlgmr.msra.gmra.mxu1 %vm252_vm0, %v225_v21 }
  0x7f   : > { %v250_v22 = vpop.permute.xlu0 %249 }
  0x87   : > { %v301_v30 = vpop.permute.xlu0 %300 }
  0x9e   : > { %v273_v23 = vpop.f32.mrf.mxu0  ;;  %v293_v24 = vpop.f32.mrf.mxu1 }
  0x9f   : > { %v274_v25 = vadd.f32 %v273_v23, %v250_v22  ;;  %v294_v26 = vadd.f32 %v293_v24, %v250_v22 }
  0xa1   : > { %v296_v27 = vmax.f32 %v274_v25, 0.0  ;;  %v297_v28 = vmax.f32 %v294_v26, 0.0 }
  0xa3   : > { %421 = vmatpush.msk.msra.mxu2 %vm307_vm1, %v296_v27  ;;  %423 = vmatpush.msk.msra.mxu3 %vm307_vm1, %v297_v28 }
  0xa4   : > { %422 = vmatmul.msk.f32.vlgmr.msra.gmra.mxu2 %vm303_vm2, %v227_v29  ;;  %424 = vmatmul.msk.f32.vlgmr.msra.gmra.mxu3 %vm303_vm2, %v227_v29 }
 0x127   : > { %v331_v31 = vpop.f32.mrf.mxu2  ;;  %v351_v32 = vpop.f32.mrf.mxu3 }
 0x128   : > { %v332_v33 = vadd.f32 %v331_v31, %v301_v30  ;;  %v352_v34 = vadd.f32 %v351_v32, %v301_v30 }
 0x12a   : > { %354 = vst [vmem:[%s224_s10] sm:$0x3f] %v332_v33 }
 0x12b   : > { %355 = vst [vmem:[%s224_s10 + $0x8] sm:$0x3f] %v352_v34 }
 0x12c PF: > { %s15_s18 = sadd.s32 1, %s445_s18  }
 0x12d   : > { %p12_p4 = scmp.ge.s32.totalorder %s15_s18, 4  }
 0x12f   :  { %14 = sbr.rel (!%p12_p4) target bundleno = 1 (0x1), region = 70 }

</bundles_post_ra>
